<compile_context>
chip_gen: v5e
topology: v5e:2x2
jax: 0.10.0
libtpu: 0.0.40
codegen_flags: <defaults>
</compile_context>

<pallas_src>
import functools

import jax
import jax.numpy as jnp
from jax.experimental import pallas as pl
from jax.experimental.pallas import tpu as pltpu


# Irwin-Hall(4) standardization constants: sum of 4 uniform bytes has
# mean 4*127.5 and variance 4*(256^2-1)/12; the standardized sum has
# mean 0 / variance 1 and is a good cheap approximation of N(0, 1).
_IH4_MEAN = 4 * 255 / 2.0
_IH4_INV_STD = 1.0 / (4.0 * (256.0 ** 2 - 1.0) / 12.0) ** 0.5


def _add_noise_kernel(seed_ref, mask_ref, x_ref, o_ref, *, sigma, row_stride):
    tm, tn = x_ref.shape
    i = pl.program_id(0)
    j = pl.program_id(1)

    if sigma != 0.0:  # static python branch (sigma is a compile-time float)
        # Unique 32-bit counter per *global* element -> every grid tile draws
        # an independent noise stream (per-tile seeding falls out of the
        # block offset), combined with the call-time seed from SMEM.
        row = jax.lax.broadcasted_iota(jnp.int32, (tm, tn), 0) + i * tm
        col = jax.lax.broadcasted_iota(jnp.int32, (tm, tn), 1) + j * tn
        h = (row * row_stride + col + seed_ref[0]).astype(jnp.uint32)

        # lowbias32-style integer mixer: plain VPU u32 xor/shift/mul only,
        # portable to Mosaic and to interpret mode.
        h = h ^ (h >> 16)
        h = h * jnp.uint32(0x7FEB352D)
        h = h ^ (h >> 15)
        h = h * jnp.uint32(0x846CA68B)
        h = h ^ (h >> 16)

        # TODO(synk): exact N(0,1) (Box-Muller) needs jnp.cos or pltpu.prng_*;
        # neither lowers portably here, so use the cheap Irwin-Hall(4)
        # uniform->normal approximation (mean 0, var 1, support +-3.46 sigma),
        # as sanctioned by the perf review for this mem-bound kernel.
        s = ((h & jnp.uint32(0xFF))
             + ((h >> 8) & jnp.uint32(0xFF))
             + ((h >> 16) & jnp.uint32(0xFF))
             + (h >> 24))
        z = (s.astype(jnp.int32).astype(jnp.float32) - _IH4_MEAN) * _IH4_INV_STD

        # Fold channel-dropout mask into the multiplicative factor:
        # y = x * mask * (1 + sigma * z)
        factor = mask_ref[...] * (1.0 + sigma * z)
    else:
        factor = mask_ref[...]

    o_ref[...] = (x_ref[...].astype(jnp.float32) * factor).astype(o_ref.dtype)


def _pick_tile(dim, target, align):
    """Largest tile <= target that is either the full dim or align-multiple."""
    if dim <= target:
        return dim
    return (target // align) * align


def add_noise(x, sigma=0.2, alpha=0.0, *, key=None):
    """Pallas equivalent of Add_Noise.forward(x, sigma, alpha) for NCHW x."""
    if key is None:
        key = jax.random.PRNGKey(0)
    n, c, h, w = x.shape
    nc, hw = n * c, h * w
    mask_num = int(alpha * c)

    # Fast path: noise disabled and no channel dropout -> exact identity,
    # skip the launch entirely (free eval/inference path).
    if sigma == 0.0 and mask_num == 0:
        return x

    seed_key, chan_key = jax.random.split(key)
    seed = jax.random.randint(seed_key, (1,), 0, 2**31 - 1, dtype=jnp.int32)

    # Channel-dropout mask: int(alpha*C) channels chosen without replacement,
    # same channels for every batch element (matches x[:, sample_index] = 0).
    if mask_num > 0:
        dropped = jax.random.permutation(chan_key, c)[:mask_num]
        chan_mask = jnp.ones((c,), jnp.float32).at[dropped].set(0.0)
    else:
        chan_mask = jnp.ones((c,), jnp.float32)
    mask2d = jnp.broadcast_to(chan_mask[None, :], (n, c)).reshape(nc, 1)

    x2d = x.reshape(nc, hw)  # keep native dtype (bf16 stays bf16 in HBM)

    tm = _pick_tile(nc, 256, 8)       # sublane-dim tile
    tn = _pick_tile(hw, 1024, 128)    # lane-dim tile (lane-dense stores)
    grid = (pl.cdiv(nc, tm), pl.cdiv(hw, tn))

    kernel = functools.partial(
        _add_noise_kernel, sigma=float(sigma), row_stride=hw)

    out2d = pl.pallas_call(
        kernel,
        out_shape=jax.ShapeDtypeStruct((nc, hw), x.dtype),
        grid_spec=pltpu.PrefetchScalarGridSpec(
            num_scalar_prefetch=1,                       # seed lives in SMEM
            grid=grid,
            in_specs=[
                pl.BlockSpec((tm, 1), lambda i, j, *_: (i, 0)),   # chan mask
                pl.BlockSpec((tm, tn), lambda i, j, *_: (i, j)),  # x tile
            ],
            out_specs=pl.BlockSpec((tm, tn), lambda i, j, *_: (i, j)),
        ),
        compiler_params=pltpu.CompilerParams(
            dimension_semantics=("parallel", "parallel")),
    )(seed, mask2d, x2d)

    return out2d.reshape(n, c, h, w)


if __name__ == "__main__":
    key = jax.random.PRNGKey(0)
    kx, kn = jax.random.split(key)
    # Small NCHW input consistent with the module's forward.
    x = jax.random.normal(kx, (2, 4, 16, 16), dtype=jnp.float32)

    # sigma == 0, alpha == 0: exact identity (short-circuit, no launch).
    y_id = add_noise(x, sigma=0.0, alpha=0.0, key=kn)
    jax.block_until_ready(y_id)
    assert jnp.allclose(y_id, x), "sigma=0 path should be identity"

    # Default path: multiplicative noise, no channel masking.
    y = add_noise(x, sigma=0.2, alpha=0.0, key=kn)
    jax.block_until_ready(y)
    assert y.shape == x.shape and y.dtype == x.dtype
    ratio = y / x - 1.0                     # == sigma * z
    assert abs(float(jnp.mean(ratio))) < 0.05, "noise mean should be ~0"
    assert abs(float(jnp.std(ratio)) - 0.2) < 0.05, "noise std should be ~sigma"

    # Native-dtype path: bf16 in -> bf16 out (no forced f32 casts in wrapper).
    yb = add_noise(x.astype(jnp.bfloat16), sigma=0.2, alpha=0.0, key=kn)
    jax.block_until_ready(yb)
    assert yb.dtype == jnp.bfloat16 and yb.shape == x.shape

    # Channel-dropout path: alpha=0.5 -> 2 of 4 channels zeroed everywhere.
    y_mask = add_noise(x, sigma=0.2, alpha=0.5, key=kn)
    jax.block_until_ready(y_mask)
    zero_channels = int(
        jnp.sum(jnp.all(y_mask == 0.0, axis=(0, 2, 3)).astype(jnp.int32)))
    assert zero_channels == 2, f"expected 2 zeroed channels, got {zero_channels}"

    print("KERNEL_OK")
</pallas_src>

<mosaic_0001>
module attributes {stable_mosaic.version = 11 : i64} {
  func.func @_add_noise_kernel(%arg0: i32, %arg1: i32, %arg2: memref<1xi32, #tpu.memory_space<smem>>, %arg3: memref<8x1xf32, #tpu.memory_space<vmem>>, %arg4: memref<8x256xf32, #tpu.memory_space<vmem>>, %arg5: memref<8x256xf32, #tpu.memory_space<vmem>>) attributes {dimension_semantics = [#tpu.dimension_semantics<parallel>, #tpu.dimension_semantics<parallel>], iteration_bounds = array<i64: 1, 1>, scalar_prefetch = 1 : i64, scratch_operands = 0 : i64, tpu.core_type = #tpu.core_type<tc>, window_params = [{transform_indices = @transform_0, window_bounds = array<i64: 8, 1>}, {transform_indices = @transform_1, window_bounds = array<i64: 8, 256>}, {transform_indices = @transform_2, window_bounds = array<i64: 8, 256>}]} {
    %0 = tpu.iota {dimensions = array<i32: 0>} : vector<8x256xi32>
    %c8_i32 = arith.constant 8 : i32
    %1 = arith.muli %arg0, %c8_i32 : i32
    %2 = vector.broadcast %1 : i32 to vector<8x256xi32>
    %3 = arith.addi %0, %2 : vector<8x256xi32>
    %4 = tpu.iota {dimensions = array<i32: 1>} : vector<8x256xi32>
    %c256_i32 = arith.constant 256 : i32
    %5 = arith.muli %arg1, %c256_i32 : i32
    %6 = vector.broadcast %5 : i32 to vector<8x256xi32>
    %7 = arith.addi %4, %6 : vector<8x256xi32>
    %c256_i32_0 = arith.constant 256 : i32
    %8 = vector.broadcast %c256_i32_0 : i32 to vector<8x256xi32>
    %9 = arith.muli %3, %8 : vector<8x256xi32>
    %10 = arith.addi %9, %7 : vector<8x256xi32>
    %c0 = arith.constant 0 : index
    %11 = memref.load %arg2[%c0] : memref<1xi32, #tpu.memory_space<smem>>
    %12 = vector.broadcast %11 : i32 to vector<8x256xi32>
    %13 = arith.addi %10, %12 : vector<8x256xi32>
    %c16_i32 = arith.constant 16 : i32
    %14 = vector.broadcast %c16_i32 : i32 to vector<8x256xi32>
    %15 = arith.shrui %13, %14 : vector<8x256xi32>
    %16 = arith.xori %13, %15 : vector<8x256xi32>
    %c2146121005_i32 = arith.constant 2146121005 : i32
    %17 = vector.broadcast %c2146121005_i32 : i32 to vector<8x256xi32>
    %18 = arith.muli %16, %17 : vector<8x256xi32>
    %c15_i32 = arith.constant 15 : i32
    %19 = vector.broadcast %c15_i32 : i32 to vector<8x256xi32>
    %20 = arith.shrui %18, %19 : vector<8x256xi32>
    %21 = arith.xori %18, %20 : vector<8x256xi32>
    %c-2073254261_i32 = arith.constant -2073254261 : i32
    %22 = vector.broadcast %c-2073254261_i32 : i32 to vector<8x256xi32>
    %23 = arith.muli %21, %22 : vector<8x256xi32>
    %c16_i32_1 = arith.constant 16 : i32
    %24 = vector.broadcast %c16_i32_1 : i32 to vector<8x256xi32>
    %25 = arith.shrui %23, %24 : vector<8x256xi32>
    %26 = arith.xori %23, %25 : vector<8x256xi32>
    %c255_i32 = arith.constant 255 : i32
    %27 = vector.broadcast %c255_i32 : i32 to vector<8x256xi32>
    %28 = arith.andi %26, %27 : vector<8x256xi32>
    %c8_i32_2 = arith.constant 8 : i32
    %29 = vector.broadcast %c8_i32_2 : i32 to vector<8x256xi32>
    %30 = arith.shrui %26, %29 : vector<8x256xi32>
    %c255_i32_3 = arith.constant 255 : i32
    %31 = vector.broadcast %c255_i32_3 : i32 to vector<8x256xi32>
    %32 = arith.andi %30, %31 : vector<8x256xi32>
    %33 = arith.addi %28, %32 : vector<8x256xi32>
    %c16_i32_4 = arith.constant 16 : i32
    %34 = vector.broadcast %c16_i32_4 : i32 to vector<8x256xi32>
    %35 = arith.shrui %26, %34 : vector<8x256xi32>
    %c255_i32_5 = arith.constant 255 : i32
    %36 = vector.broadcast %c255_i32_5 : i32 to vector<8x256xi32>
    %37 = arith.andi %35, %36 : vector<8x256xi32>
    %38 = arith.addi %33, %37 : vector<8x256xi32>
    %c24_i32 = arith.constant 24 : i32
    %39 = vector.broadcast %c24_i32 : i32 to vector<8x256xi32>
    %40 = arith.shrui %26, %39 : vector<8x256xi32>
    %41 = arith.addi %38, %40 : vector<8x256xi32>
    %42 = arith.sitofp %41 : vector<8x256xi32> to vector<8x256xf32>
    %cst = arith.constant 5.100000e+02 : f32
    %43 = vector.broadcast %cst : f32 to vector<8x256xf32>
    %44 = arith.subf %42, %43 : vector<8x256xf32>
    %cst_6 = arith.constant 0.00676587503 : f32
    %45 = vector.broadcast %cst_6 : f32 to vector<8x256xf32>
    %46 = arith.mulf %44, %45 : vector<8x256xf32>
    %c0_7 = arith.constant 0 : index
    %c0_8 = arith.constant 0 : index
    %47 = vector.load %arg3[%c0_7, %c0_8] : memref<8x1xf32, #tpu.memory_space<vmem>>, vector<8x1xf32>
    %cst_9 = arith.constant 2.000000e-01 : f32
    %48 = vector.broadcast %cst_9 : f32 to vector<8x256xf32>
    %49 = arith.mulf %48, %46 : vector<8x256xf32>
    %cst_10 = arith.constant 1.000000e+00 : f32
    %50 = vector.broadcast %cst_10 : f32 to vector<8x256xf32>
    %51 = arith.addf %50, %49 : vector<8x256xf32>
    %52 = vector.broadcast %47 : vector<8x1xf32> to vector<8x256xf32>
    %53 = arith.mulf %52, %51 : vector<8x256xf32>
    %c0_11 = arith.constant 0 : index
    %c0_12 = arith.constant 0 : index
    %54 = vector.load %arg4[%c0_11, %c0_12] : memref<8x256xf32, #tpu.memory_space<vmem>>, vector<8x256xf32>
    %55 = arith.mulf %54, %53 : vector<8x256xf32>
    %c0_13 = arith.constant 0 : index
    %c0_14 = arith.constant 0 : index
    %56 = vector.load %arg5[%c0_13, %c0_14] : memref<8x256xf32, #tpu.memory_space<vmem>>, vector<8x256xf32>
    tpu.vector_store %arg5[%c0_13, %c0_14], %55 {strides = array<i32>} : memref<8x256xf32, #tpu.memory_space<vmem>>, vector<8x256xf32>,
    return
  }
  func.func @transform_0(%arg0: i32, %arg1: i32, %arg2: memref<1xi32, #tpu.memory_space<smem>>) -> (i32, i32) {
    %c0_i32 = arith.constant 0 : i32
    %c0_i32_0 = arith.constant 0 : i32
    return %arg0, %c0_i32 : i32, i32
  }
  func.func @transform_1(%arg0: i32, %arg1: i32, %arg2: memref<1xi32, #tpu.memory_space<smem>>) -> (i32, i32) {
    %c0_i32 = arith.constant 0 : i32
    return %arg0, %arg1 : i32, i32
  }
  func.func @transform_2(%arg0: i32, %arg1: i32, %arg2: memref<1xi32, #tpu.memory_space<smem>>) -> (i32, i32) {
    %c0_i32 = arith.constant 0 : i32
    return %arg0, %arg1 : i32, i32
  }
}

</mosaic_0001>

<bundles_post_ra>
// kernel: tpu_custom_call.1
= control target key start
LH: loop header
LB: loop body
LE: loop exit
PB: predicated region body
PF: predicated region fallthrough
CT: control target
= control target key end

     0   :  { %9 = vsyncpa [#allocation5], 0  ;;  %s215_s0 = inlined_call_operand.<no memory space> [shape: s32[1], index: 0, kind: input, shape index: {}]   ;;  %s216_s1 = inlined_call_operand.vmem [shape: f32[8,1], index: 1, kind: input, shape index: {}]   ;;  %s217_s2 = inlined_call_operand.hbm [shape: f32[8,256], index: 2, kind: input, shape index: {}]   ;;  %s218_s3 = inlined_call_operand.hbm [shape: f32[8,256], index: 3, kind: output, shape index: {}]  }
   0x1   :  { %10 = vsyncpa [#allocation6], 0  ;;  %s18_s14 = sshll.u32 %s217_s2, 4  ;;  %s180_s15 = smov [#allocation4]   ;;  %s19_s14 = int_to_ptr.hbm [resolvable:$true] %s18_s14 }
   0x2   :  { %s20_s16 = sshll.u32 %s180_s15, 4  ;;  %s21_s16 = int_to_ptr.vmem [resolvable:$true] %s20_s16 }
   0x3   :  { %23 = dma.hbm_to_vmem [thread:$0]  %s19_s14, 256, %s21_s16, [#allocation5]  }
   0x4   :  { %176 = dma.done.wait [#allocation5], 256  }
   0x5   :  { %177 = vsyncadd [#allocation5], 4294967040  ;;  %v181_v0 = vmov 0   ;;  %v87_v1 = vld [vmem:[%s216_s1] sm:$0xff]  ;;  %v28_v2 = vlaneseq  ;;  %v44_v9 = vstv %s215_s0  ;;  %v100_v57 = vld [vmem:[#allocation4 + $0x8] sm:$0xff]  ;;  %s182_s0 = smov [#allocation7]  }
   0x6   :  { %127 = vset.pattern.permute.xlu0 %v181_v0  ;;  %v99_v56 = vld [vmem:[#allocation4] sm:$0xff]  ;;  %s110_s1 = sshll.u32 %s182_s0, 4  ;;  %s112_s22 = sshll.u32 %s218_s3, 4  ;;  %s111_s1 = int_to_ptr.vmem [resolvable:$true] %s110_s1  ;;  %s113_s22 = int_to_ptr.hbm [resolvable:$true] %s112_s22 }
   0x7   :  { %94 = vperm.xlu0 %127, %v87_v1   ;;  %v29_v3 = vshrl.u32 %v28_v2, 7  ;;  %v34_v4 = vand.u32 127, %v28_v2 }
   0x9   :  { %v35_v5 = vadd.s32 128, %v34_v4  ;;  %v40_v6 = vmul.u32 256, %v29_v3 }
   0xb   :  { %v41_v7 = vadd.s32 %v40_v6, %v34_v4  ;;  %v42_v8 = vadd.s32 %v40_v6, %v35_v5 }
   0xd   :  { %v45_v10 = vadd.s32 %v44_v9, %v41_v7  ;;  %v46_v11 = vadd.s32 %v44_v9, %v42_v8 }
   0xf   :  { %v47_v12 = vshrl.u32 %v45_v10, 16  ;;  %v48_v13 = vshrl.u32 %v46_v11, 16 }
  0x11   :  { %v49_v14 = vxor.u32 %v47_v12, %v45_v10  ;;  %v50_v15 = vxor.u32 %v48_v13, %v46_v11 }
  0x13   :  { %v51_v16 = vmul.u32 2146121005, %v49_v14  ;;  %v52_v17 = vmul.u32 2146121005, %v50_v15 }
  0x15   :  { %v53_v18 = vshrl.u32 %v51_v16, 15  ;;  %v54_v19 = vshrl.u32 %v52_v17, 15 }
  0x17   :  { %v55_v20 = vxor.u32 %v53_v18, %v51_v16  ;;  %v56_v21 = vxor.u32 %v54_v19, %v52_v17 }
  0x19   :  { %v57_v22 = vmul.u32 2221713035, %v55_v20  ;;  %v58_v23 = vmul.u32 2221713035, %v56_v21 }
  0x1b   :  { %v59_v24 = vshrl.u32 %v57_v22, 16  ;;  %v60_v25 = vshrl.u32 %v58_v23, 16 }
  0x1d   :  { %v61_v26 = vxor.u32 %v59_v24, %v57_v22  ;;  %v62_v27 = vxor.u32 %v60_v25, %v58_v23 }
  0x1f   :  { %v65_v28 = vshrl.u32 %v61_v26, 8  ;;  %v66_v29 = vshrl.u32 %v62_v27, 8  ;;  %v63_v30 = vand.u32 255, %v61_v26  ;;  %v64_v31 = vand.u32 255, %v62_v27 }
  0x20   :  { %v71_v34 = vshrl.u32 %v61_v26, 16  ;;  %v72_v35 = vshrl.u32 %v62_v27, 16  ;;  %v77_v42 = vshrl.u32 %v61_v26, 24  ;;  %v78_v43 = vshrl.u32 %v62_v27, 24 }
  0x21   :  { %v67_v32 = vand.u32 255, %v65_v28  ;;  %v68_v33 = vand.u32 255, %v66_v29 }
  0x22   :  { %v73_v38 = vand.u32 255, %v71_v34  ;;  %v74_v39 = vand.u32 255, %v72_v35 }
  0x23   :  { %v69_v36 = vadd.s32 %v67_v32, %v63_v30  ;;  %v70_v37 = vadd.s32 %v68_v33, %v64_v31 }
  0x25   :  { %v75_v40 = vadd.s32 %v73_v38, %v69_v36  ;;  %v76_v41 = vadd.s32 %v74_v39, %v70_v37 }
  0x27   :  { %v79_v44 = vadd.s32 %v77_v42, %v75_v40  ;;  %v80_v45 = vadd.s32 %v78_v43, %v76_v41 }
  0x29   :  { %v81_v46 = vcvt.s32.f32 %v79_v44  ;;  %v82_v47 = vcvt.s32.f32 %v80_v45 }
  0x2b   :  { %v122_v48 = vadd.f32 -510.0, %v81_v46  ;;  %v123_v49 = vadd.f32 -510.0, %v82_v47 }
  0x2d   :  { %v85_v50 = vmul.f32 0.006765875, %v122_v48  ;;  %v86_v51 = vmul.f32 0.006765875, %v123_v49 }
  0x2f   :  { %v88_v52 = vmul.f32 0.2, %v85_v50  ;;  %v89_v53 = vmul.f32 0.2, %v86_v51 }
  0x31   :  { %v90_v54 = vadd.f32 1.0, %v88_v52  ;;  %v91_v55 = vadd.f32 1.0, %v89_v53 }
  0x79   :  { %v95_v58 = vpop.permute.xlu0 %94 }
  0x7a   :  { %v97_v59 = vmul.f32 %v95_v58, %v90_v54  ;;  %v98_v60 = vmul.f32 %v95_v58, %v91_v55 }
  0x7c   :  { %v101_v61 = vmul.f32 %v99_v56, %v97_v59  ;;  %v102_v62 = vmul.f32 %v100_v57, %v98_v60 }
  0x7e   :  { %103 = vst [vmem:[#allocation7] sm:$0xff] %v101_v61 }
  0x7f   :  { %104 = vst [vmem:[#allocation7 + $0x8] sm:$0xff] %v102_v62 }
  0x80   :  { %115 = dma.vmem_to_hbm [thread:$0]  %s111_s1, 256, %s113_s22, [#allocation6]  }
  0x81   :  { %178 = dma.done.wait [#allocation6], 256  }
  0x82   :  { %179 = vsyncadd [#allocation6], 4294967040 }
  0x83   :  { %120 = vsyncpa [#allocation5], 1 }
  0x84   :  { %121 = vsyncpa [#allocation6], 1 }

</bundles_post_ra>
